<compile_context>
chip_gen: v6e
topology: v6e:2x2x1
jax: 0.10.0
libtpu: 0.0.40
codegen_flags: <defaults>
</compile_context>

<pallas_src>
import functools

import jax
import jax.numpy as jnp
from jax.experimental import pallas as pl
from jax.experimental.pallas import tpu as pltpu


def _chan_layer_norm_kernel(x_ref, g_ref, o_ref, *, eps, inv_c):
    # x_ref: (1, C, T) tile (one batch element, one spatial tile)
    # g_ref: (1, C, 1) gain, broadcast over batch and spatial
    x = x_ref[...].astype(jnp.float32)            # (1, C, T)
    g = g_ref[...].astype(jnp.float32)            # (1, C, 1)

    # Channel-wise stats on the raw tile (all reductions are over the sublane
    # axis C, fully inside each lane column -> padded lanes of a ragged last
    # tile stay lane-local and are masked on write).
    amax = jnp.max(x, axis=1, keepdims=True)                      # (1, 1, T)
    mean = jnp.sum(x, axis=1, keepdims=True) * inv_c              # (1, 1, T)
    d = x - mean                                                  # (1, C, T)
    var = jnp.sum(d * d, axis=1, keepdims=True) * inv_c           # (1, 1, T)

    # Fold the amax division into a per-column scale:
    #   out = (x - mean) * (1/a) * rsqrt(var * (1/a)^2 + eps) * g
    inv_a = pl.reciprocal(amax, approx=False)                     # (1, 1, T)
    scale = inv_a * jax.lax.rsqrt(var * (inv_a * inv_a) + eps)    # (1, 1, T)

    # Recompute (x - mean) in the output pass (VPU op, hidden under DMA)
    # instead of keeping a persistent centered block in the VMEM budget.
    o_ref[...] = ((x - mean) * scale * g).astype(o_ref.dtype)


def _vmem_budget_and_limit():
    """Generation-aware scoped-VMEM limit and per-block tiling budget."""
    try:
        cap = pltpu.get_tpu_info().vmem_capacity_bytes
    except Exception:
        cap = 64 * 1024 * 1024  # conservative (v7x-sized) fallback
    # v5e/v6e (128 MiB physical) -> 64 MiB scoped limit; v7x (64 MiB) -> 48 MiB.
    limit = int(min(64 * 1024 * 1024, (cap * 3) // 4))
    # ~4 live copies of a block (2x double-buffered in + 2x out; intermediates
    # are recomputed) must fit in half the limit, leaving headroom for Mosaic
    # internal scratch.
    budget = limit // 2
    return budget, limit


def _choose_tile_hw(hw, c, itemsize, budget):
    """Lane-dense spatial tile: multiple of 128, 128..2048 lanes, VMEM-safe."""
    if hw < 128:
        # Full-extent block (legal even when not a multiple of 128).
        return hw
    max_lanes = max(128, budget // (4 * c * max(itemsize, 4)))
    hw_padded = ((hw + 127) // 128) * 128
    for t in (2048, 1024, 512, 256, 128):
        if t <= max_lanes and t <= hw_padded:
            return t
    return 128


def chan_layer_norm(x, g, eps=1e-05):
    """x: (N, C, H, W) float array, g: (1, C, 1, 1) gain."""
    N, C, H, W = x.shape
    HW = H * W
    x3 = x.reshape(N, C, HW)
    g3 = jnp.asarray(g).reshape(1, C, 1)

    itemsize = jnp.dtype(x.dtype).itemsize
    budget, vmem_limit = _vmem_budget_and_limit()
    tile_hw = _choose_tile_hw(HW, C, itemsize, budget)

    # v7x has 2 TensorCores that split "parallel" grid axes: when N == 1 make
    # sure the HW axis contributes at least 2 blocks (no effect on v5e/v6e).
    if N * pl.cdiv(HW, tile_hw) < 2 and HW > 128:
        half = -(-HW // 2)
        tile_hw = max(128, ((half + 127) // 128) * 128)

    grid = (N, pl.cdiv(HW, tile_hw))

    kernel = functools.partial(_chan_layer_norm_kernel, eps=eps, inv_c=1.0 / C)

    # Bandwidth-heavy hint for XLA's scheduler around the custom call.
    cost = pl.CostEstimate(
        flops=8 * N * C * HW,
        transcendentals=2 * N * HW,
        bytes_accessed=2 * N * C * HW * itemsize + C * itemsize,
    )

    out3 = pl.pallas_call(
        kernel,
        out_shape=jax.ShapeDtypeStruct((N, C, HW), x.dtype),
        grid_spec=pltpu.PrefetchScalarGridSpec(
            num_scalar_prefetch=0,
            grid=grid,
            in_specs=[
                pl.BlockSpec((1, C, tile_hw), lambda n, s: (n, 0, s)),
                pl.BlockSpec((1, C, 1), lambda n, s: (0, 0, 0)),
            ],
            out_specs=pl.BlockSpec((1, C, tile_hw), lambda n, s: (n, 0, s)),
        ),
        compiler_params=pltpu.CompilerParams(
            # Reduction is only over C, inside each block -> both grid axes
            # are independent and can be sharded across TensorCores.
            dimension_semantics=("parallel", "parallel"),
            vmem_limit_bytes=vmem_limit,
        ),
        cost_estimate=cost,
    )(x3, g3)

    return out3.reshape(N, C, H, W)


def chan_layer_norm_ref(x, g, eps=1e-05):
    """Pure-JAX reference mirroring the PyTorch forward."""
    amax = jnp.max(x, axis=1, keepdims=True)
    x = x / amax
    mean = jnp.mean(x, axis=1, keepdims=True)
    var = jnp.mean((x - mean) ** 2, axis=1, keepdims=True)
    return (x - mean) * jax.lax.rsqrt(var + eps) * g


if __name__ == "__main__":
    key = jax.random.PRNGKey(0)

    # Primary (module-sized) test: batch=2, channels=4, spatial=16x16.
    N, C, H, W = 2, 4, 16, 16
    x = jax.random.normal(key, (N, C, H, W), dtype=jnp.float32)
    # nn.Parameter(torch.ones(1, dim, 1, 1)) — deterministic ones init
    g = jnp.ones((1, C, 1, 1), dtype=jnp.float32)

    out = jax.block_until_ready(chan_layer_norm(x, g))
    ref = chan_layer_norm_ref(x, g)
    assert out.shape == (N, C, H, W)
    assert jnp.allclose(out, ref, atol=2e-5, rtol=2e-5), "mismatch (small)"

    # Tiled spatial grid axis (HW is a multiple of the tile).
    k1, k2 = jax.random.split(key)
    x2 = jax.random.normal(k1, (2, 8, 64, 64), dtype=jnp.float32)
    g2 = jnp.ones((1, 8, 1, 1), dtype=jnp.float32)
    out2 = jax.block_until_ready(chan_layer_norm(x2, g2))
    ref2 = chan_layer_norm_ref(x2, g2)
    assert jnp.allclose(out2, ref2, atol=2e-5, rtol=2e-5), "mismatch (tiled)"

    # Ragged last tile (HW = 28*28 = 784 is not a multiple of 128).
    x3 = jax.random.normal(k2, (2, 32, 28, 28), dtype=jnp.float32)
    g3 = jnp.ones((1, 32, 1, 1), dtype=jnp.float32)
    out3 = jax.block_until_ready(chan_layer_norm(x3, g3))
    ref3 = chan_layer_norm_ref(x3, g3)
    assert jnp.allclose(out3, ref3, atol=2e-5, rtol=2e-5), "mismatch (ragged)"

    print("KERNEL_OK")
</pallas_src>

<mosaic_0001>
module attributes {stable_mosaic.version = 11 : i64} {
  func.func @_chan_layer_norm_kernel(%arg0: i32, %arg1: i32, %arg2: memref<1x4x256xf32, #tpu.memory_space<vmem>>, %arg3: memref<1x4x1xf32, #tpu.memory_space<vmem>>, %arg4: memref<1x4x256xf32, #tpu.memory_space<vmem>>) attributes {dimension_semantics = [#tpu.dimension_semantics<parallel>, #tpu.dimension_semantics<parallel>], iteration_bounds = array<i64: 2, 1>, scalar_prefetch = 0 : i64, scratch_operands = 0 : i64, tpu.core_type = #tpu.core_type<tc>, window_params = [{transform_indices = @transform_0, window_bounds = array<i64: 1, 4, 256>}, {pipeline_mode = #tpu.pipeline_mode<synchronous>, transform_indices = @transform_1, window_bounds = array<i64: 1, 4, 1>}, {transform_indices = @transform_2, window_bounds = array<i64: 1, 4, 256>}]} {
    %c0 = arith.constant 0 : index
    %c0_0 = arith.constant 0 : index
    %c0_1 = arith.constant 0 : index
    %0 = vector.load %arg2[%c0, %c0_0, %c0_1] : memref<1x4x256xf32, #tpu.memory_space<vmem>>, vector<1x4x256xf32>
    %c0_2 = arith.constant 0 : index
    %c0_3 = arith.constant 0 : index
    %c0_4 = arith.constant 0 : index
    %1 = vector.load %arg3[%c0_2, %c0_3, %c0_4] : memref<1x4x1xf32, #tpu.memory_space<vmem>>, vector<1x4x1xf32>
    %cst = arith.constant dense<0xFF800000> : vector<1x256xf32>
    %2 = vector.multi_reduction <maximumf>, %0, %cst [1] : vector<1x4x256xf32> to vector<1x256xf32>
    %3 = vector.shape_cast %2 : vector<1x256xf32> to vector<1x1x256xf32>
    %cst_5 = arith.constant dense<0.000000e+00> : vector<1x256xf32>
    %4 = vector.multi_reduction <add>, %0, %cst_5 [1] : vector<1x4x256xf32> to vector<1x256xf32>
    %5 = vector.shape_cast %4 : vector<1x256xf32> to vector<1x1x256xf32>
    %cst_6 = arith.constant 2.500000e-01 : f32
    %6 = vector.broadcast %cst_6 : f32 to vector<1x1x256xf32>
    %7 = arith.mulf %5, %6 : vector<1x1x256xf32>
    %8 = vector.broadcast %7 : vector<1x1x256xf32> to vector<1x4x256xf32>
    %9 = arith.subf %0, %8 : vector<1x4x256xf32>
    %10 = arith.mulf %9, %9 : vector<1x4x256xf32>
    %cst_7 = arith.constant dense<0.000000e+00> : vector<1x256xf32>
    %11 = vector.multi_reduction <add>, %10, %cst_7 [1] : vector<1x4x256xf32> to vector<1x256xf32>
    %12 = vector.shape_cast %11 : vector<1x256xf32> to vector<1x1x256xf32>
    %cst_8 = arith.constant 2.500000e-01 : f32
    %13 = vector.broadcast %cst_8 : f32 to vector<1x1x256xf32>
    %14 = arith.mulf %12, %13 : vector<1x1x256xf32>
    %15 = tpu.reciprocal %3 : vector<1x1x256xf32> -> vector<1x1x256xf32>
    %16 = arith.mulf %15, %15 : vector<1x1x256xf32>
    %17 = arith.mulf %14, %16 : vector<1x1x256xf32>
    %cst_9 = arith.constant 9.99999974E-6 : f32
    %18 = vector.broadcast %cst_9 : f32 to vector<1x1x256xf32>
    %19 = arith.addf %17, %18 : vector<1x1x256xf32>
    %20 = math.rsqrt %19 : vector<1x1x256xf32>
    %21 = arith.mulf %15, %20 : vector<1x1x256xf32>
    %22 = vector.broadcast %7 : vector<1x1x256xf32> to vector<1x4x256xf32>
    %23 = arith.subf %0, %22 : vector<1x4x256xf32>
    %24 = vector.broadcast %21 : vector<1x1x256xf32> to vector<1x4x256xf32>
    %25 = arith.mulf %23, %24 : vector<1x4x256xf32>
    %26 = vector.broadcast %1 : vector<1x4x1xf32> to vector<1x4x256xf32>
    %27 = arith.mulf %25, %26 : vector<1x4x256xf32>
    %c0_10 = arith.constant 0 : index
    %c0_11 = arith.constant 0 : index
    %c0_12 = arith.constant 0 : index
    %28 = vector.load %arg4[%c0_10, %c0_11, %c0_12] : memref<1x4x256xf32, #tpu.memory_space<vmem>>, vector<1x4x256xf32>
    tpu.vector_store %arg4[%c0_10, %c0_11, %c0_12], %27 {strides = array<i32>} : memref<1x4x256xf32, #tpu.memory_space<vmem>>, vector<1x4x256xf32>,
    return
  }
  func.func @transform_0(%arg0: i32, %arg1: i32) -> (i32, i32, i32) {
    %c0_i32 = arith.constant 0 : i32
    %c0_i32_0 = arith.constant 0 : i32
    return %arg0, %c0_i32, %arg1 : i32, i32, i32
  }
  func.func @transform_1(%arg0: i32, %arg1: i32) -> (i32, i32, i32) {
    %c0_i32 = arith.constant 0 : i32
    %c0_i32_0 = arith.constant 0 : i32
    %c0_i32_1 = arith.constant 0 : i32
    %c0_i32_2 = arith.constant 0 : i32
    return %c0_i32, %c0_i32_0, %c0_i32_1 : i32, i32, i32
  }
  func.func @transform_2(%arg0: i32, %arg1: i32) -> (i32, i32, i32) {
    %c0_i32 = arith.constant 0 : i32
    %c0_i32_0 = arith.constant 0 : i32
    return %arg0, %c0_i32, %arg1 : i32, i32, i32
  }
}

</mosaic_0001>

<bundles_post_ra>
// kernel: tpu_custom_call.1
= control target key start
LH: loop header
LB: loop body
LE: loop exit
PB: predicated region body
PF: predicated region fallthrough
CT: control target
= control target key end

     0   :  { %7 = vsyncpa [#allocation3], 0  ;;  %s740_s0 = inlined_call_operand.hbm [shape: f32[2,4,256], index: 0, kind: input, shape index: {}]   ;;  %s741_s1 = inlined_call_operand.vmem [shape: f32[1,4,1], index: 1, kind: input, shape index: {}]   ;;  %s742_s2 = inlined_call_operand.hbm [shape: f32[2,4,256], index: 2, kind: output, shape index: {}]  }
   0x1   :  { %9 = vsyncpa [#allocation3 + $0x1], 0 }
   0x2   :  { %10 = vsyncpa [#allocation4], 0 }
   0x3   :  { %12 = vsyncpa [#allocation4 + $0x1], 0  ;;  %s593_s9 = smov 0   ;;  %s595_s10 = smov 0  }
   0x4   :  { %s597_s11 = smov 0   ;;  %s599_s12 = smov 0  }
   0x5   :  { %s601_s13 = smov 0   ;;  %s603_s14 = smov 0  }
   0x6 LB: > { %s373_s15 = sadd.s32 4294967295, %s572_s14   ;;  %s374_s16 = sadd.s32 4294967294, %s572_s14   ;;  %s572_s14 = sphi %s603_s14, %s18_s14   ;;  %s568_s13 = sphi %s601_s13, %s754_s13   ;;  %s564_s12 = sphi %s599_s12, %s753_s12   ;;  %s560_s11 = sphi %s597_s11, %s752_s11   ;;  %s556_s10 = sphi %s595_s10, %s751_s10   ;;  %s552_s9 = sphi %s593_s9, %s750_s9  }
   0x7   : > { %s30_s17 = sadd.s32 1, %s568_s13  ;;  %s39_s18 = sadd.s32 1, %s560_s11 }
   0x8   : > { %p32_p0 = scmp.ge.s32.totalorder %s30_s17, 2  ;;  %p46_p1 = scmp.ne.s32.totalorder %s560_s11, %s556_s10 }
   0x9   : > { %p47_p2 = scmp.eq.s32.totalorder %s572_s14, 0  ;;  %p52_p3 = scmp.ne.s32.totalorder %s556_s10, %s552_s9 }
   0xa   : > { %s756_s17 = smov (%p32_p0, %s30_s17), 0  ;;  %p53_p5 = scmp.eq.s32.totalorder %s373_s15, 0 }
   0xb   : > { %p634_p4 = por %p47_p2, %p46_p1  ;;  %s34_s20 = ssub.s32 %s568_s13, %s756_s17 }
   0xc   : > { %p99_p6 = scmp.eq.s32.totalorder %s373_s15, 1  ;;  %p37_p7 = scmp.eq.s32.totalorder %s34_s20, 0 }
   0xd   : > { %p640_p8 = por %p53_p5, %p52_p3  ;;  %p105_p10 = scmp.eq.s32.totalorder %s374_s16, 1 }
   0xe   : > { %p644_p9 = por %p99_p6, %p46_p1  ;;  %p402_p13 = scmp.lt.s32.totalorder %s572_s14, 2 }
   0xf   : > { %s649_s23 = scalar_select %p37_p7, %s560_s11, %s39_s18  }
  0x10   : > { %p651_p11 = por %p105_p10, %p52_p3  ;;  %s128_s25 = sand.u32 1, %s560_s11  }
  0x11   : > { %s377_s26 = sshll.u32 %s128_s25, 3  ;;  %s388_s27 = sshll.u32 %s568_s13, 7 }
  0x12   : > { %s746_s24 = scalar_select %p651_p11, 1, 0 }
  0x13   : > { %s140_s30 = scalar_lea.hbm %s740_s0, %s388_s27  ;;  %s132_s3 = scalar_lea.vmem [#allocation2], %s377_s26 }
  0x14   : > { %s142_s4 = sshll.u32 %s132_s3, 4  ;;  %p664_p0 = pnand %p402_p13, %p634_p4  ;;  %s143_s4 = int_to_ptr.vmem [resolvable:$true] %s142_s4 }
  0x15   : > { %p380_p1 = scmp.ge.s32.totalorder %s572_s14, 1  ;;  %p147_p2 = scmp.lt.s32.totalorder %s572_s14, 3 }
  0x16   : > { %s129_s6 = scalar_lea.sflag [#allocation3], %s128_s25  ;;  %p466_p3 = pneg %p664_p0 }
  0x17   : > { %s477_s7 = scalar_lea.vmem %s143_s4, 128  ;;  %s574_s8 = smov [#allocation2]  }
  0x18   : > { %p478_p5 = scmp.ne.s32.totalorder %s143_s4, %s477_s7  ;;  %s482_s15 = sshll.u32 %s574_s8, 4  ;;  %s483_s15 = int_to_ptr.vmem [resolvable:$false] %s482_s15 }
  0x19   : > { %s484_s16 = scalar_lea.vmem %s483_s15, 256  ;;  %p485_p10 = scmp.lt.s32.totalorder %s143_s4, %s483_s15 }
  0x1a   : > { %p480_p6 = pnand %p478_p5, %p466_p3  ;;  %p486_p12 = scmp.lt.s32.totalorder %s484_s16, %s477_s7 }
  0x1c   : > { %p481_p7 = pneg %p480_p6  ;;  %p487_p4 = por %p486_p12, %p485_p10 }
  0x1e   : > { %p488_p13 = pnand %p487_p4, %p481_p7 }
  0x20   : > { %491 = shalt.err (!%p488_p13)
}
  0x21   : > { %397 = dma.hbm_to_vmem [thread:$0]  (!%p664_p0), %s140_s30, 128, %s143_s4, %s129_s6  }
  0x22   : > { %p148_p11 = pnand %p380_p1, %p147_p2 }
  0x23   : > { %s679_s18 = sand.u32 (!%p148_p11), 1, %s556_s10  }
  0x24   : > { %151 = sbr.rel (%p148_p11) target bundleno = 185 (0xb9), region = 28  ;;  %s381_s19 = sshll.u32 (!%p148_p11), %s679_s18, 3 }
  0x25   : > { %s154_s20 = scalar_lea.sflag (!%p148_p11), [#allocation3], %s679_s18  ;;  %s157_s25 = scalar_lea.vmem (!%p148_p11), [#allocation2], %s381_s19 }
  0x29   : > { %543 = dma.done.wait (%p640_p8), %s154_s20, 128  }
  0x2a   : > { %545 = vsyncadd (%p640_p8), %s154_s20, 4294967168  ;;  %v575_v0 = vmov 0   ;;  %v181_v1 = vld [vmem:[%s741_s1] sm:$0xf]  ;;  %vm185_vm0 = vcmask 1043456   ;;  %s389_s21 = sshll.u32 %s564_s12, 7 }
  0x2b   : > { %454 = vset.pattern.permute.xlu0 %v575_v0  ;;  %v180_v2 = vld [vmem:[%s157_s25] sm:$0xff]  ;;  %v576_v0 = vmov 839922192   ;;  %s177_s28 = scalar_lea.vmem [#allocation5], %s381_s19  ;;  %s287_s4 = scalar_lea.hbm %s742_s2, %s389_s21 }
  0x2c   : > { %260 = vperm.xlu0 %454, %v181_v1   ;;  %v183_v3 = vcombine.high %v180_v2, %v180_v2  ;;  %v200_v4 = vsel %vm185_vm0, %v180_v2, 0.0  ;;  %v186_v20 = vsel %vm185_vm0, %v180_v2, -inf  ;;  %v263_v1 = vunpack.c.l.s4 %v576_v0  ;;  %s289_s29 = sshll.u32 %s177_s28, 4  ;;  %s273_s5 = scalar_lea.sflag [#allocation4], %s679_s18  ;;  %s290_s29 = int_to_ptr.vmem [resolvable:$true] %s289_s29 }
  0x2d   : > { %v201_v6 = vrot.slane %v200_v4, 4  ;;  %v187_v23 = vrot.slane %v186_v20, 4  ;;  %s492_s6 = scalar_lea.vmem %s290_s29, 128  ;;  %s577_s7 = smov [#allocation5]  }
  0x2e   : > { %v207_v5 = vsel %vm185_vm0, %v183_v3, 0.0  ;;  %v193_v21 = vsel %vm185_vm0, %v183_v3, -inf  ;;  %p493_p8 = scmp.ne.s32.totalorder %s290_s29, %s492_s6  ;;  %s496_s8 = sshll.u32 %s577_s7, 4  ;;  %s497_s8 = int_to_ptr.vmem [resolvable:$false] %s496_s8 }
  0x2f   : > { %v208_v7 = vrot.slane %v207_v5, 4  ;;  %v202_v8 = vadd.f32 %v201_v6, %v200_v4  ;;  %v194_v24 = vrot.slane %v193_v21, 4  ;;  %v188_v26 = vmax.f32 %v186_v20, %v187_v23  ;;  %s498_s12 = scalar_lea.vmem %s497_s8, 256  ;;  %p499_p0 = scmp.lt.s32.totalorder %s290_s29, %s497_s8 }
  0x30   : > { %p494_p11 = pnand %p493_p8, %p644_p9  ;;  %p500_p1 = scmp.lt.s32.totalorder %s498_s12, %s492_s6 }
  0x31   : > { %v209_v9 = vadd.f32 %v208_v7, %v207_v5  ;;  %v203_v10 = vrot.slane %v202_v8, 2  ;;  %v195_v27 = vmax.f32 %v193_v21, %v194_v24  ;;  %v189_v29 = vrot.slane %v188_v26, 2 }
  0x32   : > { %v264_v5 = vunpack.c.0.s8 %v263_v1  ;;  %p495_p12 = pneg %p494_p11  ;;  %p501_p2 = por %p500_p1, %p499_p0 }
  0x33   : > { %v210_v11 = vrot.slane %v209_v9, 2  ;;  %v204_v12 = vadd.f32 %v203_v10, %v202_v8  ;;  %v196_v30 = vrot.slane %v195_v27, 2  ;;  %v190_v32 = vmax.f32 %v188_v26, %v189_v29 }
  0x34   : > { %p502_p3 = pnand %p501_p2, %p495_p12 }
  0x35   : > { %v211_v13 = vadd.f32 %v210_v11, %v209_v9  ;;  %v205_v14 = vrot.slane %v204_v12, 1  ;;  %v197_v33 = vmax.f32 %v195_v27, %v196_v30  ;;  %v191_v36 = vrot.slane %v190_v32, 1 }
  0x37   : > { %v212_v15 = vrot.slane %v211_v13, 1  ;;  %v206_v16 = vadd.f32 %v205_v14, %v204_v12  ;;  %v198_v38 = vrot.slane %v197_v33, 1  ;;  %v192_v40 = vmax.f32 %v190_v32, %v191_v36 }
  0x39   : > { %v213_v17 = vadd.f32 %v212_v15, %v211_v13  ;;  %v214_v18 = vmul.f32 0.25, %v206_v16  ;;  %v199_v42 = vmax.f32 %v197_v33, %v198_v38  ;;  %456 = vrcp.f32 %v192_v40 }
  0x3b   : > { %v215_v19 = vmul.f32 0.25, %v213_v17  ;;  %458 = vrcp.f32 %v199_v42 }
  0x3d   : > { %v218_v22 = vcombine.low %v214_v18, %v215_v19 }
  0x3f   : > { %v220_v25 = vsub.f32 %v180_v2, %v218_v22  ;;  %v265_v2 = vlaneseq }
  0x41   : > { %v221_v28 = vmul.f32 %v220_v25, %v220_v25  ;;  %v266_v6 = vshrl.u32 %v265_v2, 7 }
  0x43   : > { %v223_v31 = vcombine.high %v221_v28, %v221_v28  ;;  %v225_v34 = vsel %vm185_vm0, %v221_v28, 0.0  ;;  %v267_v8 = vsub.s32 %v264_v5, %v266_v6 }
  0x44   : > { %v226_v37 = vrot.slane %v225_v34, 4 }
  0x45   : > { %v232_v35 = vsel %vm185_vm0, %v223_v31, 0.0 }
  0x46   : > { %v233_v39 = vrot.slane %v232_v35, 4  ;;  %v227_v41 = vadd.f32 %v226_v37, %v225_v34  ;;  %v457_v51 = vpop.eup %456 }
  0x47   : > { %v243_v55 = vmul.f32 %v457_v51, %v457_v51 }
  0x48   : > { %v234_v43 = vadd.f32 %v233_v39, %v232_v35  ;;  %v228_v44 = vrot.slane %v227_v41, 2  ;;  %v459_v53 = vpop.eup %458 }
  0x49   : > { %v244_v57 = vmul.f32 %v459_v53, %v459_v53 }
  0x4a   : > { %v235_v45 = vrot.slane %v234_v43, 2  ;;  %v229_v46 = vadd.f32 %v228_v44, %v227_v41 }
  0x4c   : > { %v236_v47 = vadd.f32 %v235_v45, %v234_v43  ;;  %v230_v48 = vrot.slane %v229_v46, 1 }
  0x4e   : > { %v237_v49 = vrot.slane %v236_v47, 1  ;;  %v231_v50 = vadd.f32 %v230_v48, %v229_v46 }
  0x50   : > { %v238_v52 = vadd.f32 %v237_v49, %v236_v47  ;;  %v239_v54 = vmul.f32 0.25, %v231_v50 }
  0x52   : > { %v240_v56 = vmul.f32 0.25, %v238_v52  ;;  %v245_v58 = vmul.f32 %v243_v55, %v239_v54 }
  0x54   : > { %v246_v59 = vmul.f32 %v244_v57, %v240_v56  ;;  %v247_v60 = vadd.f32 1e-05, %v245_v58 }
  0x56   : > { %v248_v61 = vadd.f32 1e-05, %v246_v59  ;;  %460 = vrsqrt.f32 %v247_v60 }
  0x58   : > { %462 = vrsqrt.f32 %v248_v61 }
  0x63   : > { %v461_v62 = vpop.eup %460 }
  0x64   : > { %v251_v3 = vmul.f32 %v461_v62, %v457_v51 }
  0x65   : > { %v463_v63 = vpop.eup %462 }
  0x66   : > { %v252_v4 = vmul.f32 %v463_v63, %v459_v53 }
  0x68   : > { %v255_v7 = vcombine.low %v251_v3, %v252_v4 }
  0x6a   : > { %v257_v9 = vmul.f32 %v255_v7, %v220_v25 }
  0xa7   : > { %v261_v10 = vpop.permute.xlu0 %260 }
  0xa8   : > { %v268_v11 = vrot.slane %v261_v10, %v267_v8 }
  0xaa   : > { %v270_v12 = vmul.f32 %v268_v11, %v257_v9 }
  0xac   : > { %271 = vst [vmem:[%s177_s28] sm:$0xff] %v270_v12 }
  0xad   : > { %505 = shalt.err (!%p502_p3)
}
  0xae   : > { %s506_s15 = scalar_lea.hbm %s287_s4, 128  ;;  %s510_s19 = scalar_lea.hbm %s742_s2, 256 }
  0xaf   : > { %p507_p5 = scmp.ne.s32.totalorder %s287_s4, %s506_s15  ;;  %p511_p10 = scmp.lt.s32.totalorder %s287_s4, %s742_s2 }
  0xb0   : > { %p512_p4 = scmp.lt.s32.totalorder %s510_s19, %s506_s15 }
  0xb1   : > { %p508_p6 = pnand %p507_p5, %p644_p9 }
  0xb2   : > { %p513_p13 = por %p512_p4, %p511_p10 }
  0xb3   : > { %p509_p7 = pneg %p508_p6 }
  0xb5   : > { %p514_p8 = pnand %p513_p13, %p509_p7 }
  0xb7   : > { %517 = shalt.err (!%p514_p8)
}
  0xb8   : > { %392 = dma.vmem_to_hbm [thread:$0]  (%p644_p9), %s290_s29, 128, %s287_s4, %s273_s5  }
  0xb9 PF: > { %s301_s26 = sand.u32 1, %s552_s9   ;;  %p748_p11 = scmp.ne.s32.totalorder %s746_s24, 0 }
  0xba   : > { %p749_p12 = scmp.ge.s32.totalorder %s572_s14, 2  ;;  %s302_s27 = scalar_lea.sflag [#allocation4], %s301_s26 }
  0xbc   : > { %p399_p0 = pnand %p749_p12, %p748_p11 }
  0xbe   : > { %p400_p1 = pneg %p399_p0 }
  0xc0   : > { %547 = dma.done.wait (%p400_p1), %s302_s27, 128  }
  0xc1   : > { %549 = vsyncadd (%p400_p1), %s302_s27, 4294967168  ;;  %s18_s14 = sadd.s32 1, %s572_s14   ;;  %s750_s9 = smov %s556_s10 }
  0xc2   : > { %p15_p2 = scmp.ge.s32.totalorder %s18_s14, 4   ;;  %s751_s10 = smov %s560_s11 }
  0xc3   : > { %s752_s11 = smov %s649_s23  ;;  %s753_s12 = smov %s568_s13 }
  0xc4   : > { %s754_s13 = smov %s756_s17  ;;  %17 = sbr.rel (!%p15_p2) target bundleno = 6 (0x6), region = 73 }
  0xc9   :  { %307 = vsyncpa [#allocation3], 1 }
  0xca   :  { %309 = vsyncpa [#allocation3 + $0x1], 1 }
  0xcb   :  { %310 = vsyncpa [#allocation4], 1 }
  0xcc   :  { %312 = vsyncpa [#allocation4 + $0x1], 1 }

</bundles_post_ra>
